<compile_context>
chip_gen: v7x
topology: tpu7x:2x2x1
jax: 0.10.0
libtpu: 0.0.40
codegen_flags: <defaults>
</compile_context>

<pallas_src>
import functools

import jax
import jax.numpy as jnp
from jax.experimental import pallas as pl
from jax.experimental.pallas import tpu as pltpu


_NEG_INF = float("-inf")


def _attention_kernel(x_ref, w_ref, out_ref, m_sc, l_sc, acc_sc, *,
                      t_total, t_block):
    """One (batch-block, T-tile) grid step of attention with online softmax.

    x_ref:   (BB, TT, H) input tile (kept in the input dtype)
    w_ref:   (1, H)      projection weight, f32 (bias dropped: softmax over T
                         is shift-invariant, so "+ b" cancels exactly)
    out_ref: (BB, H)     context vectors (written on the last T tile)
    m_sc:    (BB, 1) f32 running max of the scores
    l_sc:    (BB, 1) f32 running softmax normalizer
    acc_sc:  (BB, H) f32 running weighted sum
    """
    ti = pl.program_id(1)
    nt = pl.num_programs(1)

    @pl.when(ti == 0)
    def _init():
        m_sc[...] = jnp.full(m_sc.shape, _NEG_INF, dtype=jnp.float32)
        l_sc[...] = jnp.zeros(l_sc.shape, dtype=jnp.float32)
        acc_sc[...] = jnp.zeros(acc_sc.shape, dtype=jnp.float32)

    x = x_ref[...].astype(jnp.float32)               # (BB, TT, H)
    w = w_ref[...]                                    # (1, H) f32
    bb, tt, _ = x.shape

    if t_total % t_block != 0:
        # Mask the overhang of the last T tile (static no-op otherwise).
        t_idx = ti * t_block + jax.lax.broadcasted_iota(jnp.int32, (bb, tt), 1)
        valid = t_idx < t_total                       # (BB, TT)
        x = jnp.where(valid[:, :, None], x, 0.0)
    else:
        valid = None

    # scores[b, t] = sum_h x[b, t, h] * w[h]
    # VPU multiply + lane reduce: no per-batch M=1 MXU matmuls, no (BB,1,H)
    # weight broadcast materialized.
    s = jnp.sum(x * w[None, :, :], axis=-1)           # (BB, TT) f32
    if valid is not None:
        s = jnp.where(valid, s, _NEG_INF)

    # Online softmax over the time axis (lane-dense (BB, TT) tiles).
    m_prev = m_sc[...]                                            # (BB, 1)
    m_new = jnp.maximum(m_prev, jnp.max(s, axis=-1, keepdims=True))
    alpha = jnp.exp(m_prev - m_new)                               # (BB, 1)
    p = jnp.exp(s - m_new)                                        # (BB, TT)
    l_sc[...] = alpha * l_sc[...] + jnp.sum(p, axis=-1, keepdims=True)
    # Context accumulation: VPU multiply + sublane reduce over T.
    acc_sc[...] = alpha * acc_sc[...] + jnp.sum(p[:, :, None] * x, axis=1)
    m_sc[...] = m_new

    @pl.when(ti == nt - 1)
    def _finalize():
        denom = l_sc[...]
        inv = pl.reciprocal(denom, approx=True)                   # EUP slot
        inv = inv * (2.0 - denom * inv)                           # 1 Newton step
        out_ref[...] = (acc_sc[...] * inv).astype(out_ref.dtype)


def _round_up(n, m):
    return ((n + m - 1) // m) * m


def _vmem_budget():
    """Returns (per-block VMEM budget bytes, two_tensorcores?, physical VMEM)."""
    try:
        cap = int(pltpu.get_tpu_info().vmem_capacity_bytes)
    except Exception:
        # Unknown generation: conservative budget that fits every TPU.
        return 22 << 20, False, 64 << 20
    two_cores = cap <= (96 << 20)            # v7x: 64 MiB per TC, 2 TCs/chip
    budget = (22 << 20) if two_cores else (44 << 20)   # v5e/v6e: 128 MiB VMEM
    return budget, two_cores, cap


def _choose_tiling(B, T, H, itemsize, budget, two_cores):
    """Pick (batch rows per block, timesteps per block).

    Byte model per (row, timestep): double-buffered input tile in its own
    dtype plus one f32 working copy / product; per row: f32 accumulator,
    double-buffered output and (BB, 1) scratch.
    """
    row_cost_full_t = T * H * (2 * itemsize + 8) + H * (2 * itemsize + 16)
    max_rows = int(budget // row_cost_full_t)

    # 1) Whole batch + full T in a single block, unless we deliberately split
    #    2-way across the two v7x TensorCores.
    if max_rows >= B and not (two_cores and B >= 16):
        return B, T

    # 2) Batch blocked in multiples of 8 (sublane-dense output stores), full T.
    if max_rows >= 8:
        bb = min((max_rows // 8) * 8, _round_up(B, 8))
        if two_cores and B >= 16:
            bb = min(bb, max(8, _round_up((B + 1) // 2, 8)))  # even 2-way split
        return bb, T

    # 3) Smallest sublane-dense batch block (8 rows) with a T-tiled
    #    online softmax (keeps v7x's 64 MiB VMEM happy for long T).
    step_cost = 8 * H * (2 * itemsize + 8)
    fixed_cost = 8 * H * (2 * itemsize + 16)
    tt = max(8, int(max(0, budget - fixed_cost) // step_cost) // 8 * 8)
    tt = min(tt, _round_up(T, 8))
    # TODO(synk): for extremely large H even an (8, 8, H) tile may not fit
    # VMEM; that would additionally need H-tiling of the context.
    return 8, tt


def attention_forward(lstm_out, attn_weight, attn_bias=None, *,
                      block_rows=None, block_t=None):
    """lstm_out: (B, T, H); attn_weight: (1, H) torch Linear layout; attn_bias: (1,).

    The bias is accepted for API parity but unused: softmax over T cancels a
    constant shift exactly, so dropping it is bit-compatible with the module.
    `block_rows` / `block_t` override the auto tiling (multiples of 8, or the
    full dimension); used to exercise the blocked paths in tests.
    """
    del attn_bias
    B, T, H = lstm_out.shape
    dtype = lstm_out.dtype
    itemsize = jnp.dtype(dtype).itemsize
    # Keep the projection weight in f32 so bf16 inputs see f32 score accuracy.
    w = attn_weight.reshape(1, H).astype(jnp.float32)

    budget, two_cores, vmem_cap = _vmem_budget()
    bb, tt = _choose_tiling(B, T, H, itemsize, budget, two_cores)
    if block_rows is not None:
        bb = block_rows
    if block_t is not None:
        tt = block_t

    b_pad = _round_up(B, bb)
    grid = (b_pad // bb, pl.cdiv(T, tt))

    kernel = functools.partial(_attention_kernel, t_total=T, t_block=tt)

    cost = pl.CostEstimate(
        flops=4 * B * T * H,                 # score mul-add + weighted sum
        transcendentals=B * T,               # the exps
        bytes_accessed=B * T * H * itemsize + B * H * itemsize + 4 * H,
    )

    out = pl.pallas_call(
        kernel,
        out_shape=jax.ShapeDtypeStruct((b_pad, H), dtype),
        grid_spec=pltpu.PrefetchScalarGridSpec(
            num_scalar_prefetch=0,
            grid=grid,
            in_specs=[
                pl.BlockSpec((bb, tt, H), lambda bi, ti: (bi, ti, 0)),
                # constant block index -> weight is not re-DMA'd across steps
                pl.BlockSpec((1, H), lambda bi, ti: (0, 0)),
            ],
            out_specs=pl.BlockSpec((bb, H), lambda bi, ti: (bi, 0)),
            scratch_shapes=[
                pltpu.VMEM((bb, 1), jnp.float32),   # running max
                pltpu.VMEM((bb, 1), jnp.float32),   # running normalizer
                pltpu.VMEM((bb, H), jnp.float32),   # running weighted sum
            ],
        ),
        compiler_params=pltpu.CompilerParams(
            dimension_semantics=("parallel", "arbitrary"),
            vmem_limit_bytes=int(min(vmem_cap, budget + budget // 2 + (2 << 20))),
        ),
        cost_estimate=cost,
    )(lstm_out, w)
    return out[:B] if b_pad != B else out


def _reference(lstm_out, attn_weight, attn_bias):
    # Pure-JAX reference mirroring the torch module (bias included here to
    # demonstrate the kernel's bias drop is mathematically equivalent).
    scores = jnp.einsum("bth,oh->bto", lstm_out, attn_weight) + attn_bias  # (B,T,1)
    weights = jax.nn.softmax(scores, axis=1)
    return jnp.sum(weights * lstm_out, axis=1)                             # (B,H)


if __name__ == "__main__":
    key = jax.random.PRNGKey(0)

    cases = [
        # (B, T, H, dtype, block_rows, block_t, tol)
        (2, 8, 32, jnp.float32, None, None, 1e-4),     # module-spec small shape
        (8, 16, 128, jnp.float32, None, None, 1e-4),   # lane-dense auto path
        (10, 20, 128, jnp.float32, 8, 8, 1e-4),        # batch pad + T tiles + tail mask
        (8, 16, 128, jnp.bfloat16, None, None, 3e-2),  # bf16 input path
    ]
    for (B, T, H, dt, br, bt, tol) in cases:
        k_x, k_w, k_b, key = jax.random.split(key, 4)
        lstm_out = jax.random.normal(k_x, (B, T, H), dtype=jnp.float32)
        # deterministic "Linear(hidden_dim, 1)" params (torch layout)
        bound = 1.0 / (H ** 0.5)
        attn_weight = jax.random.uniform(k_w, (1, H), jnp.float32, -bound, bound)
        attn_bias = jax.random.uniform(k_b, (1,), jnp.float32, -bound, bound)

        out = attention_forward(lstm_out.astype(dt), attn_weight, attn_bias,
                                block_rows=br, block_t=bt)
        out = jax.block_until_ready(out)

        ref = _reference(lstm_out, attn_weight, attn_bias)
        assert out.shape == (B, H), f"bad shape {out.shape} at {(B, T, H, dt)}"
        assert jnp.allclose(out.astype(jnp.float32), ref, atol=tol, rtol=tol), \
            f"mismatch vs reference at {(B, T, H, dt)}"

    print("KERNEL_OK")
</pallas_src>

<mosaic_0001>
module attributes {stable_mosaic.version = 11 : i64} {
  func.func @_attention_kernel(%arg0: i32, %arg1: i32, %arg2: memref<2x8x32xf32, #tpu.memory_space<vmem>>, %arg3: memref<1x32xf32, #tpu.memory_space<vmem>>, %arg4: memref<2x32xf32, #tpu.memory_space<vmem>>, %arg5: memref<2x1xf32, #tpu.memory_space<vmem>>, %arg6: memref<2x1xf32, #tpu.memory_space<vmem>>, %arg7: memref<2x32xf32, #tpu.memory_space<vmem>>) attributes {dimension_semantics = [#tpu.dimension_semantics<parallel>, #tpu.dimension_semantics<arbitrary>], iteration_bounds = array<i64: 1, 1>, scalar_prefetch = 0 : i64, scratch_operands = 3 : i64, tpu.core_type = #tpu.core_type<tc>, window_params = [{transform_indices = @transform_0, window_bounds = array<i64: 2, 8, 32>}, {pipeline_mode = #tpu.pipeline_mode<synchronous>, transform_indices = @transform_1, window_bounds = array<i64: 1, 32>}, {transform_indices = @transform_2, window_bounds = array<i64: 2, 32>}]} {
    %c0_i32 = arith.constant 0 : i32
    %0 = arith.cmpi eq, %arg1, %c0_i32 : i32
    %1 = arith.extui %0 : i1 to i32
    %c0_i32_0 = arith.constant 0 : i32
    %2 = arith.cmpi ne, %1, %c0_i32_0 : i32
    scf.if %2 {
      %cst_22 = arith.constant 0xFF800000 : f32
      %37 = vector.broadcast %cst_22 : f32 to vector<2x1xf32>
      %c0_23 = arith.constant 0 : index
      %c0_24 = arith.constant 0 : index
      %38 = vector.load %arg5[%c0_23, %c0_24] : memref<2x1xf32, #tpu.memory_space<vmem>>, vector<2x1xf32>
      tpu.vector_store %arg5[%c0_23, %c0_24], %37 {strides = array<i32>} : memref<2x1xf32, #tpu.memory_space<vmem>>, vector<2x1xf32>,
      %cst_25 = arith.constant 0.000000e+00 : f32
      %39 = vector.broadcast %cst_25 : f32 to vector<2x1xf32>
      %c0_26 = arith.constant 0 : index
      %c0_27 = arith.constant 0 : index
      %40 = vector.load %arg6[%c0_26, %c0_27] : memref<2x1xf32, #tpu.memory_space<vmem>>, vector<2x1xf32>
      tpu.vector_store %arg6[%c0_26, %c0_27], %39 {strides = array<i32>} : memref<2x1xf32, #tpu.memory_space<vmem>>, vector<2x1xf32>,
      %cst_28 = arith.constant 0.000000e+00 : f32
      %41 = vector.broadcast %cst_28 : f32 to vector<2x32xf32>
      %c0_29 = arith.constant 0 : index
      %c0_30 = arith.constant 0 : index
      %42 = vector.load %arg7[%c0_29, %c0_30] : memref<2x32xf32, #tpu.memory_space<vmem>>, vector<2x32xf32>
      tpu.vector_store %arg7[%c0_29, %c0_30], %41 {strides = array<i32>} : memref<2x32xf32, #tpu.memory_space<vmem>>, vector<2x32xf32>,
    } else {
    }
    %c0 = arith.constant 0 : index
    %c0_1 = arith.constant 0 : index
    %c0_2 = arith.constant 0 : index
    %3 = vector.load %arg2[%c0, %c0_1, %c0_2] : memref<2x8x32xf32, #tpu.memory_space<vmem>>, vector<2x8x32xf32>
    %c0_3 = arith.constant 0 : index
    %c0_4 = arith.constant 0 : index
    %4 = vector.load %arg3[%c0_3, %c0_4] : memref<1x32xf32, #tpu.memory_space<vmem>>, vector<1x32xf32>
    %5 = vector.shape_cast %4 : vector<1x32xf32> to vector<1x1x32xf32>
    %6 = vector.broadcast %5 : vector<1x1x32xf32> to vector<2x8x32xf32>
    %7 = arith.mulf %3, %6 : vector<2x8x32xf32>
    %cst = arith.constant dense<0.000000e+00> : vector<2x8xf32>
    %8 = vector.multi_reduction <add>, %7, %cst [2] : vector<2x8x32xf32> to vector<2x8xf32>
    %c0_5 = arith.constant 0 : index
    %c0_6 = arith.constant 0 : index
    %9 = vector.load %arg5[%c0_5, %c0_6] : memref<2x1xf32, #tpu.memory_space<vmem>>, vector<2x1xf32>
    %cst_7 = arith.constant dense<0xFF800000> : vector<2xf32>
    %10 = vector.multi_reduction <maximumf>, %8, %cst_7 [1] : vector<2x8xf32> to vector<2xf32>
    %11 = vector.shape_cast %10 : vector<2xf32> to vector<2x1xf32>
    %12 = arith.maximumf %9, %11 : vector<2x1xf32>
    %13 = arith.subf %9, %12 : vector<2x1xf32>
    %14 = math.exp %13 : vector<2x1xf32>
    %15 = vector.broadcast %12 : vector<2x1xf32> to vector<2x8xf32>
    %16 = arith.subf %8, %15 : vector<2x8xf32>
    %17 = math.exp %16 : vector<2x8xf32>
    %c0_8 = arith.constant 0 : index
    %c0_9 = arith.constant 0 : index
    %18 = vector.load %arg6[%c0_8, %c0_9] : memref<2x1xf32, #tpu.memory_space<vmem>>, vector<2x1xf32>
    %19 = arith.mulf %14, %18 : vector<2x1xf32>
    %cst_10 = arith.constant dense<0.000000e+00> : vector<2xf32>
    %20 = vector.multi_reduction <add>, %17, %cst_10 [1] : vector<2x8xf32> to vector<2xf32>
    %21 = vector.shape_cast %20 : vector<2xf32> to vector<2x1xf32>
    %22 = arith.addf %19, %21 : vector<2x1xf32>
    %c0_11 = arith.constant 0 : index
    %c0_12 = arith.constant 0 : index
    %23 = vector.load %arg6[%c0_11, %c0_12] : memref<2x1xf32, #tpu.memory_space<vmem>>, vector<2x1xf32>
    tpu.vector_store %arg6[%c0_11, %c0_12], %22 {strides = array<i32>} : memref<2x1xf32, #tpu.memory_space<vmem>>, vector<2x1xf32>,
    %c0_13 = arith.constant 0 : index
    %c0_14 = arith.constant 0 : index
    %24 = vector.load %arg7[%c0_13, %c0_14] : memref<2x32xf32, #tpu.memory_space<vmem>>, vector<2x32xf32>
    %25 = vector.broadcast %14 : vector<2x1xf32> to vector<2x32xf32>
    %26 = arith.mulf %25, %24 : vector<2x32xf32>
    %27 = vector.shape_cast %17 : vector<2x8xf32> to vector<2x8x1xf32>
    %28 = vector.broadcast %27 : vector<2x8x1xf32> to vector<2x8x32xf32>
    %29 = arith.mulf %28, %3 : vector<2x8x32xf32>
    %cst_15 = arith.constant dense<0.000000e+00> : vector<2x32xf32>
    %30 = vector.multi_reduction <add>, %29, %cst_15 [1] : vector<2x8x32xf32> to vector<2x32xf32>
    %31 = arith.addf %26, %30 : vector<2x32xf32>
    %c0_16 = arith.constant 0 : index
    %c0_17 = arith.constant 0 : index
    %32 = vector.load %arg7[%c0_16, %c0_17] : memref<2x32xf32, #tpu.memory_space<vmem>>, vector<2x32xf32>
    tpu.vector_store %arg7[%c0_16, %c0_17], %31 {strides = array<i32>} : memref<2x32xf32, #tpu.memory_space<vmem>>, vector<2x32xf32>,
    %c0_18 = arith.constant 0 : index
    %c0_19 = arith.constant 0 : index
    %33 = vector.load %arg5[%c0_18, %c0_19] : memref<2x1xf32, #tpu.memory_space<vmem>>, vector<2x1xf32>
    tpu.vector_store %arg5[%c0_18, %c0_19], %12 {strides = array<i32>} : memref<2x1xf32, #tpu.memory_space<vmem>>, vector<2x1xf32>,
    %c0_i32_20 = arith.constant 0 : i32
    %34 = arith.cmpi eq, %arg1, %c0_i32_20 : i32
    %35 = arith.extui %34 : i1 to i32
    %c0_i32_21 = arith.constant 0 : i32
    %36 = arith.cmpi ne, %35, %c0_i32_21 : i32
    scf.if %36 {
      %c0_22 = arith.constant 0 : index
      %c0_23 = arith.constant 0 : index
      %37 = vector.load %arg6[%c0_22, %c0_23] : memref<2x1xf32, #tpu.memory_space<vmem>>, vector<2x1xf32>
      %38 = tpu.reciprocal %37 {approx = true} : vector<2x1xf32> -> vector<2x1xf32>
      %39 = arith.mulf %37, %38 : vector<2x1xf32>
      %cst_24 = arith.constant 2.000000e+00 : f32
      %40 = vector.broadcast %cst_24 : f32 to vector<2x1xf32>
      %41 = arith.subf %40, %39 : vector<2x1xf32>
      %42 = arith.mulf %38, %41 : vector<2x1xf32>
      %c0_25 = arith.constant 0 : index
      %c0_26 = arith.constant 0 : index
      %43 = vector.load %arg7[%c0_25, %c0_26] : memref<2x32xf32, #tpu.memory_space<vmem>>, vector<2x32xf32>
      %44 = vector.broadcast %42 : vector<2x1xf32> to vector<2x32xf32>
      %45 = arith.mulf %43, %44 : vector<2x32xf32>
      %c0_27 = arith.constant 0 : index
      %c0_28 = arith.constant 0 : index
      %46 = vector.load %arg4[%c0_27, %c0_28] : memref<2x32xf32, #tpu.memory_space<vmem>>, vector<2x32xf32>
      tpu.vector_store %arg4[%c0_27, %c0_28], %45 {strides = array<i32>} : memref<2x32xf32, #tpu.memory_space<vmem>>, vector<2x32xf32>,
    } else {
    }
    return
  }
  func.func @transform_0(%arg0: i32, %arg1: i32) -> (i32, i32, i32) {
    %c0_i32 = arith.constant 0 : i32
    %c0_i32_0 = arith.constant 0 : i32
    return %arg0, %arg1, %c0_i32 : i32, i32, i32
  }
  func.func @transform_1(%arg0: i32, %arg1: i32) -> (i32, i32) {
    %c0_i32 = arith.constant 0 : i32
    %c0_i32_0 = arith.constant 0 : i32
    %c0_i32_1 = arith.constant 0 : i32
    return %c0_i32, %c0_i32_0 : i32, i32
  }
  func.func @transform_2(%arg0: i32, %arg1: i32) -> (i32, i32) {
    %c0_i32 = arith.constant 0 : i32
    %c0_i32_0 = arith.constant 0 : i32
    return %arg0, %c0_i32 : i32, i32
  }
}

</mosaic_0001>

<bundles_post_ra>
// kernel: tpu_custom_call.1
= control target key start
LH: loop header
LB: loop body
LE: loop exit
PB: predicated region body
PF: predicated region fallthrough
CT: control target
= control target key end

     0   :  { %7 = vsyncpa [#allocation6], 0  ;;  %s318_s0 = inlined_call_operand.hbm [shape: f32[2,8,32], index: 0, kind: input, shape index: {}]   ;;  %s319_s1 = inlined_call_operand.vmem [shape: f32[1,32], index: 1, kind: input, shape index: {}]   ;;  %s320_s2 = inlined_call_operand.hbm [shape: f32[2,32], index: 2, kind: output, shape index: {}]  }
   0x1   :  { %8 = vsyncpa [#allocation7], 0  ;;  %s253_s9 = smov [#allocation5]   ;;  %s205_s13 = scalar_lea.hbm %s318_s0, 256 }
   0x2   :  { %s14_s10 = sshll.u32 %s253_s9, 4  ;;  %p206_p0 = scmp.ne.s32.totalorder %s318_s0, %s205_s13  ;;  %s15_s10 = int_to_ptr.vmem [resolvable:$true] %s14_s10 }
   0x3   :  { %p209_p1 = scmp.lt.u32.totalorder %s205_s13, %s318_s0 }
   0x5   :  { %p211_p2 = pnand %p209_p1, %p206_p0 }
   0x7   :  { %214 = shalt.err (!%p211_p2)
}
   0x8   :  { %s215_s18 = scalar_lea.vmem %s15_s10, 256  ;;  %p220_p4 = scmp.lt.s32.totalorder %s15_s10, %s15_s10 }
   0x9   :  { %p216_p3 = scmp.ne.s32.totalorder %s15_s10, %s215_s18  ;;  %p221_p5 = scmp.lt.s32.totalorder %s215_s18, %s215_s18 }
   0xb   :  { %p222_p6 = por %p221_p5, %p220_p4 }
   0xd   :  { %p223_p7 = pnand %p222_p6, %p216_p3 }
   0xf   :  { %226 = shalt.err (!%p223_p7)
}
  0x10   :  { %s254_s19 = smov 128   ;;  %s255_s20 = smov 8  }
  0x11   :  { %20 = dma.hbm_to_vmem [thread:$0]  %s318_s0, 256, %s15_s10, [#allocation6], %s254_s19, %s254_s19, %s255_s20  }
  0x12   :  { %249 = dma.done.wait [#allocation6], 256  }
  0x13   :  { %250 = vsyncadd [#allocation6], 4294967040  ;;  %v35_v0 = vld [vmem:[#allocation5] sm:$0xff]  ;;  %v187_v1 = vld [vmem:[%s319_s1] ss:$0 sm:$0xff]  ;;  %vm46_vm0 = vcmask 261120   ;;  %v56_v8 = vlaneseq }
  0x14   :  { %v36_v2 = vld [vmem:[#allocation5 + $0x8] sm:$0xff]  ;;  %v44_v3 = vmul.f32 %v187_v1, %v35_v0  ;;  %vm30_vm1 = vcmask 1024   ;;  %v256_v7 = vmov -inf   ;;  %vm66_vm2 = vcmask 1041409   ;;  %s259_s0 = smov [#allocation8]  }
  0x15   :  { %v45_v4 = vmul.f32 %v187_v1, %v36_v2  ;;  %31 = vst.msk [vmem:[#allocation2] sm:$0x3] %vm30_vm1, %v256_v7  ;;  %v57_v9 = vand.u32 127, %v56_v8  ;;  %v59_v10 = vshrl.u32 %v56_v8, 7  ;;  %vm69_vm3 = vcmask 58368   ;;  %s178_s1 = sshll.u32 %s259_s0, 4  ;;  %s179_s1 = int_to_ptr.vmem [resolvable:$true] %s178_s1 }
  0x16   :  { %v47_v5 = vsel %vm46_vm0, %v44_v3, 0.0  ;;  %v257_v18 = vmov 0   ;;  %v258_v19 = vmov 0.0   ;;  %vm33_vm4 = vcmask 254976   ;;  %s227_s25 = scalar_lea.vmem %s179_s1, 32  ;;  %p232_p9 = scmp.lt.s32.totalorder %s179_s1, %s179_s1 }
  0x17   :  { %48 = vadd.xlane.f32.xlu0 %v47_v5  ;;  %v50_v6 = vsel %vm46_vm0, %v45_v4, 0.0  ;;  %v60_v12 = vsub.s32 %v57_v9, %v59_v10  ;;  %195 = vset.pattern.permute.xlu1 %v257_v18  ;;  %32 = vst.msk [vmem:[#allocation3] sm:$0x3] %vm30_vm1, %v258_v19  ;;  %v83_v24 = vsub.s32 0, %v59_v10  ;;  %v87_v25 = vsub.s32 1, %v59_v10  ;;  %p228_p8 = scmp.ne.s32.totalorder %s179_s1, %s227_s25  ;;  %p233_p10 = scmp.lt.s32.totalorder %s227_s25, %s227_s25 }
  0x18   :  { %196 = vset.pattern.permute.xlu0 %v257_v18  ;;  %34 = vst.msk [vmem:[#allocation4] sm:$0x3] %vm33_vm4, %v258_v19 }
  0x19   :  { %p234_p11 = por %p233_p10, %p232_p9 }
  0x1b   :  { %51 = vadd.xlane.f32.xlu0 %v50_v6  ;;  %p235_p12 = pnand %p234_p11, %p228_p8 }
  0x1c   :  { %v53_v20 = vld [vmem:[#allocation2] sm:$0x3] }
  0x1f   :  { %v123_v57 = vld [vmem:[#allocation4] sm:$0x3] }
  0xa4   :  { %v49_v11 = vpop.xlane.xlu0 %48 }
  0xa5   :  { %v61_v14 = vrot.slane %v49_v11, %v60_v12 }
  0xa8   :  { %v52_v13 = vpop.xlane.xlu0 %51 }
  0xa9   :  { %v65_v15 = vrot.slane %v52_v13, %v60_v12 }
  0xab   :  { %v67_v16 = vsel %vm66_vm2, %v65_v15, %v61_v14 }
  0xac   :  { %v70_v17 = vsel %vm69_vm3, %v67_v16, -inf }
  0xad   :  { %71 = vmax.xlane.f32.xlu1 %v70_v17 }
 0x13a   :  { %v72_v21 = vpop.xlane.xlu1 %71 }
 0x13b   :  { %v73_v22 = vmax.f32 %v53_v20, %v72_v21 }
 0x13d   :  { %v74_v23 = vsub.f32 %v53_v20, %v73_v22  ;;  %155 = vst.msk [vmem:[#allocation2] sm:$0x3] %vm30_vm1, %v73_v22  ;;  %79 = vperm.xlu1 %195, %v73_v22  }
 0x13f   :  { %v75_v33 = vmul.f32 1.442695, %v74_v23 }
 0x1bc   :  { %v80_v26 = vpop.permute.xlu1 %79 }
 0x1bd   :  { %v84_v27 = vrot.slane %v80_v26, %v83_v24  ;;  %v88_v28 = vrot.slane %v80_v26, %v87_v25 }
 0x1bf   :  { %v91_v29 = vsub.f32 %v49_v11, %v84_v27  ;;  %v92_v30 = vsub.f32 %v52_v13, %v88_v28 }
 0x1c1   :  { %v93_v31 = vmul.f32 1.442695, %v91_v29  ;;  %v95_v32 = vmul.f32 1.442695, %v92_v30 }
 0x1c3   :  { %197 = vpow2.f32 %v93_v31 }
 0x1c4   :  { %199 = vpow2.f32 %v95_v32 }
 0x1c5   :  { %201 = vpow2.f32 %v75_v33 }
 0x1cd   :  { %v198_v34 = vpop.eup %197 }
 0x1ce   :  { %v200_v35 = vpop.eup %199  ;;  %102 = vperm.xlu0 %196, %v198_v34  }
 0x1cf   :  { %105 = vperm.xlu1 %195, %v200_v35   ;;  %v202_v36 = vpop.eup %201 }
 0x1d2   :  { %126 = vperm.xlu0 %196, %v202_v36  }
 0x24d   :  { %v103_v37 = vpop.permute.xlu0 %102 }
 0x24e   :  { %v106_v38 = vpop.permute.xlu1 %105  ;;  %v110_v39 = vrot.slane %v103_v37, %v60_v12  ;;  %v132_v40 = vmul.f32 %v103_v37, %v35_v0  ;;  %v97_v0 = vld [vmem:[#allocation3] sm:$0x3] }
 0x24f   :  { %v114_v41 = vrot.slane %v106_v38, %v60_v12  ;;  %v133_v42 = vmul.f32 %v106_v38, %v36_v2  ;;  %v98_v1 = vmul.f32 %v202_v36, %v97_v0 }
 0x250   :  { %v134_v43 = vsel %vm46_vm0, %v132_v40, 0.0 }
 0x251   :  { %v141_v44 = vsel %vm46_vm0, %v133_v42, 0.0  ;;  %v135_v45 = vrot.slane %v134_v43, 4  ;;  %v115_v46 = vsel %vm66_vm2, %v114_v41, %v110_v39  ;;  %v127_v58 = vpop.permute.xlu0 %126 }
 0x252   :  { %v142_v47 = vrot.slane %v141_v44, 4  ;;  %v117_v48 = vsel %vm69_vm3, %v115_v46, 0.0  ;;  %v129_v61 = vmul.f32 %v127_v58, %v123_v57 }
 0x253   :  { %v136_v49 = vadd.f32 %v135_v45, %v134_v43  ;;  %118 = vadd.xlane.f32.xlu1 %v117_v48 }
 0x254   :  { %v143_v50 = vadd.f32 %v142_v47, %v141_v44 }
 0x255   :  { %v137_v51 = vrot.slane %v136_v49, 2 }
 0x256   :  { %v144_v52 = vrot.slane %v143_v50, 2 }
 0x257   :  { %v138_v53 = vadd.f32 %v137_v51, %v136_v49 }
 0x258   :  { %v145_v54 = vadd.f32 %v144_v52, %v143_v50 }
 0x259   :  { %v139_v55 = vrot.slane %v138_v53, 1 }
 0x25a   :  { %v146_v56 = vrot.slane %v145_v54, 1 }
 0x25b   :  { %v140_v59 = vadd.f32 %v139_v55, %v138_v53 }
 0x25c   :  { %v147_v60 = vadd.f32 %v146_v56, %v145_v54 }
 0x25e   :  { %v150_v62 = vsel %vm66_vm2, %v147_v60, %v140_v59 }
 0x25f   :  { %v152_v63 = vadd.f32 %v150_v62, %v129_v61 }
 0x261   :  { %154 = vst.msk [vmem:[#allocation4] sm:$0x3] %vm33_vm4, %v152_v63 }
 0x268   :  { %v164_v9 = vld [vmem:[#allocation4] sm:$0x3] }
 0x2e0   :  { %v119_v2 = vpop.xlane.xlu1 %118 }
 0x2e1   :  { %v120_v3 = vadd.f32 %v119_v2, %v98_v1 }
 0x2e3   :  { %122 = vst.msk [vmem:[#allocation3] sm:$0x3] %vm30_vm1, %v120_v3 }
 0x2ea   :  { %v159_v4 = vld [vmem:[#allocation3] sm:$0x3] }
 0x2eb   :  { %203 = vrcp.f32 %v159_v4 }
 0x2f5   :  { %v204_v5 = vpop.eup %203 }
 0x2f6   :  { %v161_v6 = vmul.f32 %v204_v5, %v159_v4 }
 0x2f8   :  { %v162_v7 = vsub.f32 2.0, %v161_v6 }
 0x2fa   :  { %v163_v8 = vmul.f32 %v204_v5, %v162_v7 }
 0x2fc   :  { %167 = vperm.xlu0 %196, %v163_v8  }
 0x37b   :  { %v168_v10 = vpop.permute.xlu0 %167 }
 0x37c   :  { %v170_v11 = vmul.f32 %v168_v10, %v164_v9 }
 0x37e   :  { %171 = vst.msk [vmem:[#allocation8] sm:$0x3] %vm33_vm4, %v170_v11 }
 0x37f   :  { %238 = shalt.err (!%p235_p12)
}
 0x380   :  { %s239_s28 = scalar_lea.hbm %s320_s2, 32 }
 0x381   :  { %p240_p13 = scmp.ne.s32.totalorder %s320_s2, %s239_s28  ;;  %p243_p0 = scmp.lt.u32.totalorder %s239_s28, %s320_s2 }
 0x383   :  { %p245_p1 = pnand %p243_p0, %p240_p13 }
 0x385   :  { %248 = shalt.err (!%p245_p1)
}
 0x386   :  { %181 = dma.vmem_to_hbm [thread:$0]  %s179_s1, 32, %s320_s2, [#allocation7]  }
 0x387   :  { %251 = dma.done.wait [#allocation7], 32  }
 0x388   :  { %252 = vsyncadd [#allocation7], 4294967264 }
 0x389   :  { %185 = vsyncpa [#allocation6], 1 }
 0x38a   :  { %186 = vsyncpa [#allocation7], 1 }

</bundles_post_ra>
